<compile_context>
chip_gen: v7x
topology: tpu7x:2x2x1
jax: 0.10.0
libtpu: 0.0.40
codegen_flags: <defaults>
</compile_context>

<pallas_src>
import math
from functools import partial

import jax
import jax.numpy as jnp
from jax import lax
from jax.experimental import pallas as pl
from jax.experimental.pallas import tpu as pltpu

_VMEM_HEADROOM = 2 << 20  # headroom for Mosaic internal scratch per call


def _gelu_tanh(x):
    # GELU (tanh approx), factored as 0.5*x*(1 + tanh((c*x)*(1 + 0.044715*x^2)))
    # to drop one multiply per element; tanh lands on the EUP slot, so the
    # remaining mul/adds are the only VALU cost.
    c = math.sqrt(2.0 / math.pi)
    inner = (c * x) * (1.0 + 0.044715 * (x * x))
    return 0.5 * x * (1.0 + jnp.tanh(inner))


# ----------------------------- kernels ------------------------------------


def mlp_resident_kernel(x_ref, wfc_ref, bfc_ref, wproj_ref, bproj_ref, o_ref,
                        *, ep_dtype):
    # x:(TM,C) wfc:(C,H) bfc:(1,H) wproj:(H,C) bproj:(1,C) o:(TM,C)
    prec = lax.Precision.HIGHEST if x_ref.dtype == jnp.float32 else None
    h = jnp.dot(x_ref[...], wfc_ref[...],
                preferred_element_type=jnp.float32, precision=prec)
    # Bias + GELU epilogue in ep_dtype (bf16 on v6e/v7x for bf16 operands).
    h = _gelu_tanh(h.astype(ep_dtype) + bfc_ref[...].astype(ep_dtype))
    y = jnp.dot(h.astype(wproj_ref.dtype), wproj_ref[...],
                preferred_element_type=jnp.float32, precision=prec)
    o_ref[...] = (y + bproj_ref[...].astype(jnp.float32)).astype(o_ref.dtype)


def mlp_hstream_kernel(x_ref, wfc_ref, bfc_ref, wproj_ref, bproj_ref, o_ref,
                       acc_ref, *, ep_dtype):
    # Streams the hidden dimension H = 4C: W_fc block (C, TH), W_proj block
    # (TH, C), f32 (TM, C) accumulator in scratch.  GELU is elementwise in H,
    # so applying bias+GELU per H-chunk is exact.
    j = pl.program_id(1)
    prec = lax.Precision.HIGHEST if x_ref.dtype == jnp.float32 else None

    @pl.when(j == 0)
    def _():
        acc_ref[...] = jnp.zeros_like(acc_ref)

    h = jnp.dot(x_ref[...], wfc_ref[...],
                preferred_element_type=jnp.float32, precision=prec)
    h = _gelu_tanh(h.astype(ep_dtype) + bfc_ref[...].astype(ep_dtype))
    acc_ref[...] += jnp.dot(h.astype(wproj_ref.dtype), wproj_ref[...],
                            preferred_element_type=jnp.float32, precision=prec)

    @pl.when(j == pl.num_programs(1) - 1)
    def _():
        o_ref[...] = (acc_ref[...]
                      + bproj_ref[...].astype(jnp.float32)).astype(o_ref.dtype)


# ----------------------- sizing / tiling heuristics ------------------------


def _round_up(v, m):
    return ((v + m - 1) // m) * m


def _vmem_cap_bytes():
    # ~85% of physical VMEM leaves headroom for Mosaic internal scratch and
    # output double-buffers: v7x 64 MiB/TC -> ~54 MiB, v5e/v6e 128 MiB -> ~108 MiB.
    try:
        phys = int(pltpu.get_tpu_info().vmem_capacity_bytes)
    except Exception:
        phys = 64 << 20  # conservative default (v7x per-TensorCore)
    return max(16 << 20, int(phys * 0.85))


def _resident_vmem_bytes(tile_m, C, H, itemsize, ep_itemsize, weight_buffers):
    w = weight_buffers * ((2 * C * H) + H + C) * itemsize
    io = 2 * 2 * tile_m * C * itemsize                  # double-buffered x/out tiles
    inter = tile_m * H * (4 + ep_itemsize + itemsize)   # f32 dot + epilogue + cast
    return w + io + inter + _VMEM_HEADROOM


def _hstream_vmem_bytes(tile_m, tile_h, C, H, itemsize, ep_itemsize):
    w = 2 * (2 * C * tile_h + tile_h) * itemsize + C * itemsize
    io = 2 * 2 * tile_m * C * itemsize
    acc = tile_m * C * 4
    inter = tile_m * tile_h * (4 + ep_itemsize + itemsize)
    return w + io + acc + inter + _VMEM_HEADROOM


def _pick_tile_m(M):
    # Right-size tiles to M so padding is at most a few rows; keep several
    # tiles for 512 <= M < 2048 so both v7x TensorCores get useful work while
    # each still software-pipelines its x/out DMAs.
    if M < 512:
        return M                       # single full-extent tile (always legal)
    target = 256 if M < 2048 else 512
    n_tiles = pl.cdiv(M, target)
    return _round_up(pl.cdiv(M, n_tiles), 8)


def _pick_tile_h(tile_m, C, H, itemsize, ep_itemsize, cap):
    # Largest legal H-chunk (full H, or a multiple of 128 dividing H) whose
    # streamed footprint fits the VMEM cap.
    candidates = [H] + [t for t in range(H - 128, 0, -128)
                        if H % t == 0 and t % 128 == 0]
    for t in candidates:
        if _hstream_vmem_bytes(tile_m, t, C, H, itemsize, ep_itemsize) <= cap:
            return t
    return candidates[-1]


def _default_epilogue_dtype(weight_dtype):
    if jnp.dtype(weight_dtype) != jnp.dtype(jnp.bfloat16):
        return jnp.float32
    # bf16 epilogue halves VALU work + live intermediate on v6e/v7x (bf16
    # VPU/EUP); v5e has no bf16 VALU/EUP, so keep the epilogue in f32 there.
    try:
        kind = jax.devices()[0].device_kind.lower()
        if ("v5 lite" in kind) or ("v5e" in kind) or ("v5lite" in kind):
            return jnp.float32
    except Exception:
        pass
    return jnp.bfloat16


# ----------------------------- call builders -------------------------------


def _build_resident(M_pad, C, H, tile_m, out_dtype, ep_dtype,
                    single_buffer_weights, vmem_limit, cost):
    # Grid-invariant weights/biases request a single pipeline buffer so the
    # resident matrices are not pointlessly double-buffered in VMEM.
    wkw = {"pipeline_mode": pl.Buffered(1)} if single_buffer_weights else {}
    in_specs = [
        pl.BlockSpec((tile_m, C), lambda i: (i, 0)),       # x tile (pipelined)
        pl.BlockSpec((C, H), lambda i: (0, 0), **wkw),     # W_fc   (resident)
        pl.BlockSpec((1, H), lambda i: (0, 0), **wkw),     # b_fc
        pl.BlockSpec((H, C), lambda i: (0, 0), **wkw),     # W_proj (resident)
        pl.BlockSpec((1, C), lambda i: (0, 0), **wkw),     # b_proj
    ]
    return pl.pallas_call(
        partial(mlp_resident_kernel, ep_dtype=ep_dtype),
        out_shape=jax.ShapeDtypeStruct((M_pad, C), out_dtype),
        grid_spec=pltpu.PrefetchScalarGridSpec(
            num_scalar_prefetch=0,
            grid=(M_pad // tile_m,),
            in_specs=in_specs,
            out_specs=pl.BlockSpec((tile_m, C), lambda i: (i, 0)),
        ),
        compiler_params=pltpu.CompilerParams(
            dimension_semantics=("parallel",),   # M tiles shard across TCs (v7x)
            vmem_limit_bytes=vmem_limit,
        ),
        cost_estimate=cost,
    )


def _build_hstream(M_pad, C, H, tile_m, tile_h, out_dtype, ep_dtype,
                   vmem_limit, cost):
    in_specs = [
        pl.BlockSpec((tile_m, C), lambda i, j: (i, 0)),    # x tile
        pl.BlockSpec((C, tile_h), lambda i, j: (0, j)),    # W_fc chunk
        pl.BlockSpec((1, tile_h), lambda i, j: (0, j)),    # b_fc chunk
        pl.BlockSpec((tile_h, C), lambda i, j: (j, 0)),    # W_proj chunk
        pl.BlockSpec((1, C), lambda i, j: (0, 0)),         # b_proj
    ]
    return pl.pallas_call(
        partial(mlp_hstream_kernel, ep_dtype=ep_dtype),
        out_shape=jax.ShapeDtypeStruct((M_pad, C), out_dtype),
        grid_spec=pltpu.PrefetchScalarGridSpec(
            num_scalar_prefetch=0,
            grid=(M_pad // tile_m, H // tile_h),
            in_specs=in_specs,
            out_specs=pl.BlockSpec((tile_m, C), lambda i, j: (i, 0)),
            scratch_shapes=[pltpu.VMEM((tile_m, C), jnp.float32)],
        ),
        compiler_params=pltpu.CompilerParams(
            dimension_semantics=("parallel", "arbitrary"),
            vmem_limit_bytes=vmem_limit,
        ),
        cost_estimate=cost,
    )


# ------------------------------- wrapper ------------------------------------


def mlp_pallas(x, w_fc, b_fc, w_proj, b_proj, *, tile_m=None, tile_h=None,
               cast_to_bf16=False, epilogue_dtype=None):
    """GPT-2 MLP: gelu_tanh(x @ W_fc + b_fc) @ W_proj + b_proj.

    x: [B, T, C]; w_fc: [C, 4C]; b_fc: [4C]; w_proj: [4C, C]; b_proj: [C].
    f32 operands are the slow path on all TPU generations (multi-pass MXU,
    2x weight bytes); pass cast_to_bf16=True for inference to run the MXU in
    bf16 with f32 accumulation.
    """
    B, T, C = x.shape
    H = w_fc.shape[1]
    assert w_fc.shape == (C, H) and w_proj.shape == (H, C)
    M = B * T
    out_dtype = x.dtype

    if cast_to_bf16:
        x, w_fc, b_fc, w_proj, b_proj = (
            a.astype(jnp.bfloat16) for a in (x, w_fc, b_fc, w_proj, b_proj))

    itemsize = jnp.dtype(x.dtype).itemsize
    ep_dtype = (jnp.dtype(epilogue_dtype) if epilogue_dtype is not None
                else _default_epilogue_dtype(w_proj.dtype))
    ep_itemsize = jnp.dtype(ep_dtype).itemsize
    cap = _vmem_cap_bytes()

    # ---- tile_m selection (right-sized to M; minimal padding) ----
    if tile_m is None:
        tile_m = _pick_tile_m(M)
    if tile_m < M:
        tile_m = _round_up(tile_m, 8)   # sublane alignment when actually tiling

    # ---- choose resident vs H-streaming path based on the VMEM cap ----
    use_hstream = tile_h is not None
    if not use_hstream:
        # Shrink tile_m before giving up on fully-resident weights.
        while (_resident_vmem_bytes(tile_m, C, H, itemsize, ep_itemsize, 1) > cap
               and tile_m > 128):
            tile_m = max(128, _round_up(tile_m // 2, 8))
        if _resident_vmem_bytes(tile_m, C, H, itemsize, ep_itemsize, 1) > cap:
            # Weights themselves don't fit (GPT-2 large/XL bf16 on v7x, or f32
            # weights): stream the hidden dimension instead.
            use_hstream = True
            tile_h = _pick_tile_h(tile_m, C, H, itemsize, ep_itemsize, cap)
    if use_hstream:
        assert H % tile_h == 0 and (tile_h == H or tile_h % 128 == 0), \
            "tile_h must divide H and be a multiple of 128 (or equal H)"

    # ---- pad M so the grid divides evenly (at most tile_m-1 zero rows) ----
    n_m = pl.cdiv(M, tile_m)
    M_pad = n_m * tile_m
    x2 = x.reshape(M, C)
    if M_pad != M:
        x2 = jnp.pad(x2, ((0, M_pad - M), (0, 0)))

    b_fc2 = b_fc.reshape(1, H)
    b_proj2 = b_proj.reshape(1, C)
    args = (x2, w_fc, b_fc2, w_proj, b_proj2)

    cost = pl.CostEstimate(
        flops=4 * M_pad * C * H,        # two matmuls
        transcendentals=M_pad * H,      # tanh in GELU
        bytes_accessed=(2 * M_pad * C + 2 * C * H + H + C) * itemsize,
    )

    if use_hstream:
        vmem_limit = int(min(cap, max(16 << 20, _hstream_vmem_bytes(
            tile_m, tile_h, C, H, itemsize, ep_itemsize))))
        out = _build_hstream(M_pad, C, H, tile_m, tile_h, out_dtype, ep_dtype,
                             vmem_limit, cost)(*args)
    else:
        vmem_limit = int(min(cap, max(16 << 20, _resident_vmem_bytes(
            tile_m, C, H, itemsize, ep_itemsize, 1))))
        try:
            out = _build_resident(M_pad, C, H, tile_m, out_dtype, ep_dtype,
                                  True, vmem_limit, cost)(*args)
        except Exception as e:  # filtered: only pl.Buffered(1)-related errors
            msg = f"{type(e).__name__}: {e}".lower()
            if not any(tok in msg for tok in
                       ("buffered", "pipeline_mode", "buffer_count",
                        "buffer count")):
                raise
            # pl.Buffered(1) unsupported on this jax version: weights get
            # double-buffered, so recompute the VMEM limit accordingly.
            vmem_limit = int(min(cap, max(16 << 20, _resident_vmem_bytes(
                tile_m, C, H, itemsize, ep_itemsize, 2))))
            out = _build_resident(M_pad, C, H, tile_m, out_dtype, ep_dtype,
                                  False, vmem_limit, cost)(*args)

    if M_pad != M:
        out = out[:M]
    return out.reshape(B, T, C)


# ------------------------------ reference -----------------------------------


def mlp_reference(x, w_fc, b_fc, w_proj, b_proj):
    xf = x.astype(jnp.float32)
    h = jnp.einsum("btc,ch->bth", xf, w_fc.astype(jnp.float32))
    h = _gelu_tanh(h + b_fc.astype(jnp.float32))
    y = jnp.einsum("bth,hc->btc", h, w_proj.astype(jnp.float32))
    return y + b_proj.astype(jnp.float32)


if __name__ == "__main__":
    # GPT-2-shaped but tiny: n_embd = 32 -> hidden = 4 * 32 = 128.
    B_, T_, C_ = 2, 8, 32
    H_ = 4 * C_

    key = jax.random.PRNGKey(0)
    kx, k1, k2, k3, k4 = jax.random.split(key, 5)

    x = jax.random.normal(kx, (B_, T_, C_), dtype=jnp.float32)
    w_fc = jax.random.normal(k1, (C_, H_), dtype=jnp.float32) * (1.0 / math.sqrt(C_))
    b_fc = jax.random.normal(k2, (H_,), dtype=jnp.float32) * 0.01
    w_proj = jax.random.normal(k3, (H_, C_), dtype=jnp.float32) * (1.0 / math.sqrt(H_))
    b_proj = jax.random.normal(k4, (C_,), dtype=jnp.float32) * 0.01

    # 1) f32 path (precision pinned HIGHEST), single full-extent tile (M=16).
    y = jax.block_until_ready(mlp_pallas(x, w_fc, b_fc, w_proj, b_proj))
    y_ref = mlp_reference(x, w_fc, b_fc, w_proj, b_proj)
    assert y.shape == (B_, T_, C_)
    assert jnp.allclose(y, y_ref, atol=1e-4, rtol=1e-4), "f32 mismatch vs reference"

    # 2) bf16 path (native-dtype MXU operands + bf16 epilogue on v6e/v7x).
    xb = x.astype(jnp.bfloat16)
    wfb, bfb = w_fc.astype(jnp.bfloat16), b_fc.astype(jnp.bfloat16)
    wpb, bpb = w_proj.astype(jnp.bfloat16), b_proj.astype(jnp.bfloat16)
    yb = jax.block_until_ready(mlp_pallas(xb, wfb, bfb, wpb, bpb))
    yb_ref = mlp_reference(xb, wfb, bfb, wpb, bpb)
    assert jnp.allclose(yb.astype(jnp.float32), yb_ref, atol=5e-2, rtol=5e-2), \
        "bf16 mismatch vs reference"

    # 3) multi-tile ragged-M path: M = 2*300 = 600 -> 3 tiles of 200 rows,
    #    zero padding (previously padded to 1024).
    B2, T2, C2 = 2, 300, 128
    H2 = 4 * C2
    k5, k6, k7, k8, k9 = jax.random.split(jax.random.PRNGKey(1), 5)
    x_l = jax.random.normal(k5, (B2, T2, C2), dtype=jnp.float32)
    w_fc_l = jax.random.normal(k6, (C2, H2), dtype=jnp.float32) * (1.0 / math.sqrt(C2))
    b_fc_l = jax.random.normal(k7, (H2,), dtype=jnp.float32) * 0.01
    w_proj_l = jax.random.normal(k8, (H2, C2), dtype=jnp.float32) * (1.0 / math.sqrt(H2))
    b_proj_l = jax.random.normal(k9, (C2,), dtype=jnp.float32) * 0.01
    y_l = jax.block_until_ready(mlp_pallas(x_l, w_fc_l, b_fc_l, w_proj_l, b_proj_l))
    y_l_ref = mlp_reference(x_l, w_fc_l, b_fc_l, w_proj_l, b_proj_l)
    assert y_l.shape == (B2, T2, C2)
    assert jnp.allclose(y_l, y_l_ref, atol=2e-4, rtol=2e-4), "tiled mismatch vs reference"

    # 4) forced H-streaming path (the large/XL / f32-weight fallback on v7x):
    #    M = 512, C = 128, H = 512, tile_h = 128 -> grid (2, 4) with f32
    #    accumulator scratch and init/finalize via pl.when.
    B3, T3, C3 = 2, 256, 128
    H3 = 4 * C3
    ka, kb, kc, kd, ke = jax.random.split(jax.random.PRNGKey(2), 5)
    x_s = jax.random.normal(ka, (B3, T3, C3), dtype=jnp.float32)
    w_fc_s = jax.random.normal(kb, (C3, H3), dtype=jnp.float32) * (1.0 / math.sqrt(C3))
    b_fc_s = jax.random.normal(kc, (H3,), dtype=jnp.float32) * 0.01
    w_proj_s = jax.random.normal(kd, (H3, C3), dtype=jnp.float32) * (1.0 / math.sqrt(H3))
    b_proj_s = jax.random.normal(ke, (C3,), dtype=jnp.float32) * 0.01
    y_s = jax.block_until_ready(
        mlp_pallas(x_s, w_fc_s, b_fc_s, w_proj_s, b_proj_s, tile_h=128))
    y_s_ref = mlp_reference(x_s, w_fc_s, b_fc_s, w_proj_s, b_proj_s)
    assert jnp.allclose(y_s, y_s_ref, atol=2e-4, rtol=2e-4), \
        "H-streaming mismatch vs reference"

    print("KERNEL_OK")
</pallas_src>

<mosaic_0001>
module attributes {stable_mosaic.version = 11 : i64} {
  func.func @mlp_resident_kernel(%arg0: i32, %arg1: memref<16x32xf32, #tpu.memory_space<vmem>>, %arg2: memref<32x128xf32, #tpu.memory_space<vmem>>, %arg3: memref<1x128xf32, #tpu.memory_space<vmem>>, %arg4: memref<128x32xf32, #tpu.memory_space<vmem>>, %arg5: memref<1x32xf32, #tpu.memory_space<vmem>>, %arg6: memref<16x32xf32, #tpu.memory_space<vmem>>) attributes {dimension_semantics = [#tpu.dimension_semantics<parallel>], iteration_bounds = array<i64: 1>, scalar_prefetch = 0 : i64, scratch_operands = 0 : i64, tpu.core_type = #tpu.core_type<tc>, window_params = [{transform_indices = @transform_0, window_bounds = array<i64: 16, 32>}, {pipeline_mode = #tpu.pipeline_mode<synchronous>, transform_indices = @transform_1, window_bounds = array<i64: 32, 128>}, {pipeline_mode = #tpu.pipeline_mode<synchronous>, transform_indices = @transform_2, window_bounds = array<i64: 1, 128>}, {pipeline_mode = #tpu.pipeline_mode<synchronous>, transform_indices = @transform_3, window_bounds = array<i64: 128, 32>}, {pipeline_mode = #tpu.pipeline_mode<synchronous>, transform_indices = @transform_4, window_bounds = array<i64: 1, 32>}, {transform_indices = @transform_5, window_bounds = array<i64: 16, 32>}]} {
    %c0 = arith.constant 0 : index
    %c0_0 = arith.constant 0 : index
    %0 = vector.load %arg1[%c0, %c0_0] : memref<16x32xf32, #tpu.memory_space<vmem>>, vector<16x32xf32>
    %c0_1 = arith.constant 0 : index
    %c0_2 = arith.constant 0 : index
    %1 = vector.load %arg2[%c0_1, %c0_2] : memref<32x128xf32, #tpu.memory_space<vmem>>, vector<32x128xf32>
    %cst = arith.constant dense<0.000000e+00> : vector<16x128xf32>
    %2 = tpu.matmul %0, %1, %cst {dimension_numbers = #tpu.dot_dimension_numbers<[1], [0], [0], [1], [0, 0, 1, 1], [], []>, precision = #tpu.contract_precision<fp32>} : vector<16x32xf32>, vector<32x128xf32>, vector<16x128xf32> -> vector<16x128xf32>
    %c0_3 = arith.constant 0 : index
    %c0_4 = arith.constant 0 : index
    %3 = vector.load %arg3[%c0_3, %c0_4] : memref<1x128xf32, #tpu.memory_space<vmem>>, vector<1x128xf32>
    %4 = vector.broadcast %3 : vector<1x128xf32> to vector<16x128xf32>
    %5 = arith.addf %2, %4 : vector<16x128xf32>
    %cst_5 = arith.constant 0.797884583 : f32
    %6 = vector.broadcast %cst_5 : f32 to vector<16x128xf32>
    %7 = arith.mulf %6, %5 : vector<16x128xf32>
    %8 = arith.mulf %5, %5 : vector<16x128xf32>
    %cst_6 = arith.constant 4.471500e-02 : f32
    %9 = vector.broadcast %cst_6 : f32 to vector<16x128xf32>
    %10 = arith.mulf %9, %8 : vector<16x128xf32>
    %cst_7 = arith.constant 1.000000e+00 : f32
    %11 = vector.broadcast %cst_7 : f32 to vector<16x128xf32>
    %12 = arith.addf %11, %10 : vector<16x128xf32>
    %13 = arith.mulf %7, %12 : vector<16x128xf32>
    %cst_8 = arith.constant 5.000000e-01 : f32
    %14 = vector.broadcast %cst_8 : f32 to vector<16x128xf32>
    %15 = arith.mulf %14, %5 : vector<16x128xf32>
    %16 = math.tanh %13 : vector<16x128xf32>
    %cst_9 = arith.constant 1.000000e+00 : f32
    %17 = vector.broadcast %cst_9 : f32 to vector<16x128xf32>
    %18 = arith.addf %17, %16 : vector<16x128xf32>
    %19 = arith.mulf %15, %18 : vector<16x128xf32>
    %c0_10 = arith.constant 0 : index
    %c0_11 = arith.constant 0 : index
    %20 = vector.load %arg4[%c0_10, %c0_11] : memref<128x32xf32, #tpu.memory_space<vmem>>, vector<128x32xf32>
    %cst_12 = arith.constant dense<0.000000e+00> : vector<16x32xf32>
    %21 = tpu.matmul %19, %20, %cst_12 {dimension_numbers = #tpu.dot_dimension_numbers<[1], [0], [0], [1], [0, 0, 1, 1], [], []>, precision = #tpu.contract_precision<fp32>} : vector<16x128xf32>, vector<128x32xf32>, vector<16x32xf32> -> vector<16x32xf32>
    %c0_13 = arith.constant 0 : index
    %c0_14 = arith.constant 0 : index
    %22 = vector.load %arg5[%c0_13, %c0_14] : memref<1x32xf32, #tpu.memory_space<vmem>>, vector<1x32xf32>
    %23 = vector.broadcast %22 : vector<1x32xf32> to vector<16x32xf32>
    %24 = arith.addf %21, %23 : vector<16x32xf32>
    %c0_15 = arith.constant 0 : index
    %c0_16 = arith.constant 0 : index
    %25 = vector.load %arg6[%c0_15, %c0_16] : memref<16x32xf32, #tpu.memory_space<vmem>>, vector<16x32xf32>
    tpu.vector_store %arg6[%c0_15, %c0_16], %24 {strides = array<i32>} : memref<16x32xf32, #tpu.memory_space<vmem>>, vector<16x32xf32>,
    return
  }
  func.func @transform_0(%arg0: i32) -> (i32, i32) {
    %c0_i32 = arith.constant 0 : i32
    %c0_i32_0 = arith.constant 0 : i32
    return %arg0, %c0_i32 : i32, i32
  }
  func.func @transform_1(%arg0: i32) -> (i32, i32) {
    %c0_i32 = arith.constant 0 : i32
    %c0_i32_0 = arith.constant 0 : i32
    %c0_i32_1 = arith.constant 0 : i32
    return %c0_i32, %c0_i32_0 : i32, i32
  }
  func.func @transform_2(%arg0: i32) -> (i32, i32) {
    %c0_i32 = arith.constant 0 : i32
    %c0_i32_0 = arith.constant 0 : i32
    %c0_i32_1 = arith.constant 0 : i32
    return %c0_i32, %c0_i32_0 : i32, i32
  }
  func.func @transform_3(%arg0: i32) -> (i32, i32) {
    %c0_i32 = arith.constant 0 : i32
    %c0_i32_0 = arith.constant 0 : i32
    %c0_i32_1 = arith.constant 0 : i32
    return %c0_i32, %c0_i32_0 : i32, i32
  }
  func.func @transform_4(%arg0: i32) -> (i32, i32) {
    %c0_i32 = arith.constant 0 : i32
    %c0_i32_0 = arith.constant 0 : i32
    %c0_i32_1 = arith.constant 0 : i32
    return %c0_i32, %c0_i32_0 : i32, i32
  }
  func.func @transform_5(%arg0: i32) -> (i32, i32) {
    %c0_i32 = arith.constant 0 : i32
    %c0_i32_0 = arith.constant 0 : i32
    return %arg0, %c0_i32 : i32, i32
  }
}

</mosaic_0001>

<bundles_post_ra>
// kernel: tpu_custom_call.1
= control target key start
LH: loop header
LB: loop body
LE: loop exit
PB: predicated region body
PF: predicated region fallthrough
CT: control target
= control target key end

     0   :  { %vm34_vm0 = vcmask 261120   ;;  %s2402_s0 = inlined_call_operand.vmem [shape: f32[16,32], index: 0, kind: input, shape index: {}]   ;;  %s2403_s1 = inlined_call_operand.vmem [shape: f32[32,128], index: 1, kind: input, shape index: {}]   ;;  %s2404_s2 = inlined_call_operand.vmem [shape: f32[1,128], index: 2, kind: input, shape index: {}]   ;;  %s2405_s3 = inlined_call_operand.vmem [shape: f32[128,32], index: 3, kind: input, shape index: {}]   ;;  %s2406_s4 = inlined_call_operand.vmem [shape: f32[1,32], index: 4, kind: input, shape index: {}]   ;;  %s2407_s5 = inlined_call_operand.hbm [shape: f32[16,32], index: 5, kind: output, shape index: {}]  }
   0x1   :  { %v23_v0 = vld [vmem:[%s2403_s1] sm:$0xff]  ;;  %v24_v1 = vld [vmem:[%s2403_s1 + $0x8] sm:$0xff]  ;;  %v25_v2 = vld [vmem:[%s2403_s1 + $0x10] sm:$0xff] }
   0x2   :  { %v42_v3 = vand.u32 4294901760, %v23_v0  ;;  %v45_v4 = vand.u32 4294901760, %v24_v1  ;;  %v26_v5 = vld [vmem:[%s2403_s1 + $0x18] sm:$0xff]  ;;  %v48_v6 = vand.u32 4294901760, %v25_v2  ;;  %v21_v7 = vld [vmem:[%s2402_s0] sm:$0xff]  ;;  %v22_v8 = vld [vmem:[%s2402_s0 + $0x8] sm:$0xff] }
   0x3   :  { %v51_v9 = vand.u32 4294901760, %v26_v5  ;;  %v36_v10 = vsel %vm34_vm0, %v21_v7, 0  ;;  %v39_v11 = vsel %vm34_vm0, %v22_v8, 0 }
   0x4   :  { %v2082_v12 = vpack.c.bf16 %v45_v4, %v42_v3  ;;  %v2084_v13 = vand.u32 4294901760, %v36_v10  ;;  %v2086_v14 = vand.u32 4294901760, %v39_v11  ;;  %v132_v15 = vsub.f32 %v23_v0, %v42_v3 }
   0x5   :  { %10 = vsyncpa [#allocation3], 0  ;;  %v2088_v16 = vpack.c.bf16 %v51_v9, %v48_v6  ;;  %v139_v17 = vsub.f32 %v24_v1, %v45_v4  ;;  %v146_v18 = vsub.f32 %v25_v2, %v48_v6  ;;  %v153_v19 = vsub.f32 %v26_v5, %v51_v9  ;;  %v2093_v20 = vld [vmem:[%s2405_s3] sm:$0xff]  ;;  %v588_v30 = vld [vmem:[%s2405_s3 + $0x8] sm:$0xff]  ;;  %s2029_s10 = smov [#allocation2]  }
   0x6   :  { %1735 = vmatprep.subr.bf16.mxu0 %v2082_v12  ;;  %v111_v21 = vsub.f32 %v36_v10, %v2084_v13  ;;  %v121_v22 = vsub.f32 %v39_v11, %v2086_v14  ;;  %v133_v23 = vand.u32 4294901760, %v132_v15  ;;  %v611_v31 = vand.u32 4294901760, %v2093_v20  ;;  %v589_v54 = vld [vmem:[%s2405_s3 + $0x10] sm:$0xff]  ;;  %v590_v55 = vld [vmem:[%s2405_s3 + $0x18] sm:$0xff]  ;;  %v591_v60 = vld [vmem:[%s2405_s3 + $0x20] sm:$0xff]  ;;  %s1301_s11 = sshll.u32 %s2029_s10, 4  ;;  %s1302_s11 = int_to_ptr.vmem [resolvable:$true] %s1301_s11 }
   0x7   :  { %1737 = vmatpush3.bf16.msra.mxu0 %v2082_v12  ;;  %v140_v24 = vand.u32 4294901760, %v139_v17  ;;  %v147_v25 = vand.u32 4294901760, %v146_v18  ;;  %v154_v26 = vand.u32 4294901760, %v153_v19  ;;  %v614_v41 = vand.u32 4294901760, %v588_v30  ;;  %v592_v61 = vld [vmem:[%s2405_s3 + $0x28] sm:$0xff]  ;;  %v593_v3 = vld [vmem:[%s2405_s3 + $0x30] sm:$0xff]  ;;  %p2010_p1 = scmp.lt.s32.totalorder %s1302_s11, %s1302_s11 }
   0x8   :  { %1739 = vmatprep.subr.bf16.mxu0 %v2088_v16  ;;  %v112_v27 = vand.u32 4294901760, %v111_v21  ;;  %v122_v28 = vand.u32 4294901760, %v121_v22  ;;  %v134_v29 = vsub.f32 %v132_v15, %v133_v23  ;;  %v2106_v44 = vsub.f32 %v2093_v20, %v611_v31  ;;  %v594_v4 = vld [vmem:[%s2405_s3 + $0x38] sm:$0xff]  ;;  %v595_v11 = vld [vmem:[%s2405_s3 + $0x40] sm:$0xff]  ;;  %v597_v20 = vld [vmem:[%s2405_s3 + $0x50] sm:$0xff]  ;;  %s2005_s12 = scalar_lea.vmem %s1302_s11, 256 }
   0x9   :  { %v141_v32 = vsub.f32 %v139_v17, %v140_v24  ;;  %v148_v33 = vsub.f32 %v146_v18, %v147_v25  ;;  %v155_v34 = vsub.f32 %v153_v19, %v154_v26  ;;  %v2108_v47 = vsub.f32 %v588_v30, %v614_v41  ;;  %p2006_p0 = scmp.ne.s32.totalorder %s1302_s11, %s2005_s12  ;;  %p2011_p2 = scmp.lt.s32.totalorder %s2005_s12, %s2005_s12 }
   0xa   :  { %v113_v35 = vsub.f32 %v111_v21, %v112_v27  ;;  %v123_v36 = vsub.f32 %v121_v22, %v122_v28  ;;  %v135_v37 = vand.u32 4294901760, %v134_v29  ;;  %v1750_v49 = vpack.c.bf16 %v139_v17, %v132_v15  ;;  %v602_v29 = vld [vmem:[%s2405_s3 + $0x78] sm:$0xff] }
   0xb   :  { %1741 = vmatpush3.bf16.msra.mxu0 %v2088_v16  ;;  %v142_v38 = vand.u32 4294901760, %v141_v32  ;;  %v149_v39 = vand.u32 4294901760, %v148_v33  ;;  %v156_v40 = vand.u32 4294901760, %v155_v34  ;;  %v1846_v48 = vpack.c.bf16 %v2108_v47, %v2106_v44  ;;  %p2012_p3 = por %p2011_p2, %p2010_p1 }
   0xc   :  { %v114_v42 = vand.u32 4294901760, %v113_v35  ;;  %v124_v43 = vand.u32 4294901760, %v123_v36  ;;  %v1754_v50 = vpack.c.bf16 %v153_v19, %v146_v18  ;;  %v1766_v51 = vpack.c.bf16 %v140_v24, %v133_v23 }
   0xd   :  { %v1742_v45 = vpack.c.bf16 %v142_v38, %v135_v37  ;;  %v1746_v46 = vpack.c.bf16 %v156_v40, %v149_v39  ;;  %1847 = vmatprep.subr.bf16.mxu1 %v1846_v48  ;;  %v1770_v52 = vpack.c.bf16 %v154_v26, %v147_v25  ;;  %v2124_v53 = vpack.c.bf16 %v614_v41, %v611_v31  ;;  %v600_v26 = vld [vmem:[%s2405_s3 + $0x68] sm:$0xff]  ;;  %p2013_p4 = pnand %p2012_p3, %p2006_p0 }
   0xe   :  { %1466 = vmatprep.mubr.f32.mxu0 %v114_v42  ;;  %1849 = vmatpush3.bf16.msra.mxu1 %v1846_v48  ;;  %v617_v56 = vand.u32 4294901760, %v589_v54  ;;  %v620_v57 = vand.u32 4294901760, %v590_v55  ;;  %v623_v63 = vand.u32 4294901760, %v591_v60  ;;  %v626_v0 = vand.u32 4294901760, %v592_v61 }
   0xf   :  { %1467 = vmatmul.mubr.f32.vlgmr.msra.gmra.mrb[0].mxu0 %v124_v43  ;;  %1743 = vmatprep.subr.bf16.mxu0 %v1742_v45  ;;  %v629_v6 = vand.u32 4294901760, %v593_v3  ;;  %v632_v7 = vand.u32 4294901760, %v594_v4  ;;  %v641_v24 = vand.u32 4294901760, %v597_v20  ;;  %v650_v30 = vand.u32 4294901760, %v600_v26 }
  0x10   :  { %1745 = vmatpush3.bf16.msra.mxu0 %v1742_v45  ;;  %1477 = vmatprep.mubr.f32.mxu0 %v2084_v13  ;;  %v2136_v58 = vsub.f32 %v589_v54, %v617_v56  ;;  %v2138_v59 = vsub.f32 %v590_v55, %v620_v57  ;;  %v2148_v1 = vsub.f32 %v591_v60, %v623_v63  ;;  %v656_v32 = vand.u32 4294901760, %v602_v29 }
  0x11   :  { %1747 = vmatprep.subr.bf16.mxu0 %v1746_v46  ;;  %v2150_v2 = vsub.f32 %v592_v61, %v626_v0  ;;  %v2160_v8 = vpack.c.bf16 %v620_v57, %v617_v56  ;;  %v2162_v9 = vsub.f32 %v593_v3, %v629_v6  ;;  %v2164_v10 = vsub.f32 %v594_v4, %v632_v7 }
  0x12   :  { %v1850_v62 = vpack.c.bf16 %v2138_v59, %v2136_v58  ;;  %v2182_v19 = vpack.c.bf16 %v632_v7, %v629_v6  ;;  %v2209_v34 = vsub.f32 %v597_v20, %v641_v24  ;;  %v2215_v37 = vsub.f32 %v600_v26, %v650_v30 }
  0x13   :  { %v1854_v5 = vpack.c.bf16 %v2150_v2, %v2148_v1  ;;  %v2221_v40 = vsub.f32 %v602_v29, %v656_v32  ;;  %v714_v48 = vand.u32 4294901760, %v2106_v44  ;;  %v728_v55 = vand.u32 4294901760, %v2136_v58 }
  0x14   :  { %1749 = vmatpush3.bf16.msra.mxu0 %v1746_v46  ;;  %1851 = vmatprep.subr.bf16.mxu1 %v1850_v62  ;;  %v735_v56 = vand.u32 4294901760, %v2138_v59 }
  0x15   :  { %1751 = vmatprep.subr.bf16.mxu0 %v1750_v49  ;;  %1853 = vmatpush3.bf16.msra.mxu1 %v1850_v62  ;;  %v729_v60 = vsub.f32 %v2136_v58, %v728_v55  ;;  %v756_v58 = vand.u32 4294901760, %v2162_v9 }
  0x16   :  { %1855 = vmatprep.subr.bf16.mxu1 %v1854_v5  ;;  %v736_v61 = vsub.f32 %v2138_v59, %v735_v56  ;;  %v763_v59 = vand.u32 4294901760, %v2164_v10 }
  0x17   :  { %1478 = vmatmul.mubr.f32.vlgmr.msra.gmra.mrb[0].mxu0 %v2086_v14  ;;  %v730_v62 = vand.u32 4294901760, %v729_v60 }
  0x18   :  { %1753 = vmatpush3.bf16.msra.mxu0 %v1750_v49  ;;  %1488 = vmatprep.mubr.f32.mxu0 %v111_v21  ;;  %v598_v21 = vld [vmem:[%s2405_s3 + $0x58] sm:$0xff]  ;;  %v721_v49 = vand.u32 4294901760, %v2108_v47 }
  0x19   :  { %1755 = vmatprep.subr.bf16.mxu0 %v1754_v50  ;;  %1857 = vmatpush3.bf16.msra.mxu1 %v1854_v5  ;;  %v644_v25 = vand.u32 4294901760, %v598_v21 }
  0x1b   :  { %v2211_v35 = vsub.f32 %v598_v21, %v644_v25  ;;  %v2226_v42 = vpack.c.bf16 %v644_v25, %v641_v24  ;;  %v784_v24 = vand.u32 4294901760, %v2209_v34 }
  0x1c   :  { %1757 = vmatpush3.bf16.msra.mxu0 %v1754_v50  ;;  %v715_v50 = vsub.f32 %v2106_v44, %v714_v48  ;;  %v737_v44 = vand.u32 4294901760, %v736_v61  ;;  %v2298_v61 = vpack.c.bf16 %v763_v59, %v756_v58 }
  0x1d   :  { %1759 = vmatprep.subr.bf16.mxu0 %v2082_v12  ;;  %v1866_v38 = vpack.c.bf16 %v2211_v35, %v2209_v34 }
  0x1f   :  { %1489 = vmatmul.mubr.f32.vlgmr.msra.gmra.mrb[0].mxu0 %v121_v22  ;;  %v599_v22 = vld [vmem:[%s2405_s3 + $0x60] sm:$0xff] }
  0x20   :  { %1761 = vmatpush3.bf16.msra.mxu0 %v2082_v12  ;;  %1499 = vmatprep.mubr.f32.mxu0 %v112_v27  ;;  %v647_v27 = vand.u32 4294901760, %v599_v22 }
  0x21   :  { %1763 = vmatprep.subr.bf16.mxu0 %v2088_v16 }
  0x22   :  { %v2213_v36 = vsub.f32 %v599_v22, %v647_v27  ;;  %v2232_v45 = vpack.c.bf16 %v650_v30, %v647_v27 }
  0x24   :  { %1765 = vmatpush3.bf16.msra.mxu0 %v2088_v16  ;;  %v1870_v41 = vpack.c.bf16 %v2215_v37, %v2213_v36  ;;  %v798_v29 = vand.u32 4294901760, %v2213_v36 }
  0x25   :  { %1767 = vmatprep.subr.bf16.mxu0 %v1766_v51 }
  0x27   :  { %1500 = vmatmul.mubr.f32.vlgmr.msra.gmra.mrb[0].mxu0 %v122_v28  ;;  %v601_v28 = vld [vmem:[%s2405_s3 + $0x70] sm:$0xff] }
  0x28   :  { %1769 = vmatpush3.bf16.msra.mxu0 %v1766_v51  ;;  %1510 = vmatprep.mubr.f32.mxu0 %v2084_v13  ;;  %v653_v31 = vand.u32 4294901760, %v601_v28  ;;  %v722_v51 = vsub.f32 %v2108_v47, %v721_v49  ;;  %v742_v47 = vand.u32 4294901760, %v2148_v1 }
  0x29   :  { %1771 = vmatprep.subr.bf16.mxu0 %v1770_v52 }
  0x2a   :  { %v2219_v39 = vsub.f32 %v601_v28, %v653_v31  ;;  %v2236_v46 = vpack.c.bf16 %v656_v32, %v653_v31  ;;  %v723_v54 = vand.u32 4294901760, %v722_v51  ;;  %v743_v3 = vsub.f32 %v2148_v1, %v742_v47 }
  0x2b   :  { %v2290_v51 = vpack.c.bf16 %v721_v49, %v714_v48 }
  0x2c   :  { %1773 = vmatpush3.bf16.msra.mxu0 %v1770_v52  ;;  %v1874_v43 = vpack.c.bf16 %v2221_v40, %v2219_v39  ;;  %v716_v52 = vand.u32 4294901760, %v715_v50  ;;  %v744_v5 = vand.u32 4294901760, %v743_v3 }
  0x2d   :  { %1775 = vmatprep.subr.bf16.mxu0 %v2082_v12 }
  0x2e   :  { %v2249_v57 = vpack.c.bf16 %v723_v54, %v716_v52 }
  0x2f   :  { %1511 = vmatmul.mubr.f32.vlgmr.msra.gmra.mrb[0].mxu0 %v2086_v14 }
  0x30   :  { %1777 = vmatpush3.bf16.msra.mxu0 %v2082_v12  ;;  %1521 = vmatprep.mubr.f32.mxu0 %v2084_v13  ;;  %v596_v12 = vld [vmem:[%s2405_s3 + $0x48] sm:$0xff]  ;;  %v1858_v13 = vpack.c.bf16 %v2164_v10, %v2162_v9 }
  0x31   :  { %1779 = vmatprep.subr.bf16.mxu0 %v2088_v16  ;;  %v638_v15 = vand.u32 4294901760, %v596_v12 }
  0x32   :  { %1859 = vmatprep.subr.bf16.mxu1 %v1858_v13 }
  0x33   :  { %v2180_v18 = vsub.f32 %v596_v12, %v638_v15  ;;  %1861 = vmatpush3.bf16.msra.mxu1 %v1858_v13  ;;  %v764_v12 = vsub.f32 %v2164_v10, %v763_v59  ;;  %v785_v10 = vsub.f32 %v2209_v34, %v784_v24  ;;  %v819_v34 = vand.u32 4294901760, %v2221_v40 }
  0x34   :  { %1781 = vmatpush3.bf16.msra.mxu0 %v2088_v16  ;;  %v2176_v16 = vpack.c.bf16 %v626_v0, %v623_v63  ;;  %v749_v63 = vand.u32 4294901760, %v2150_v2  ;;  %v2256_v0 = vpack.c.bf16 %v737_v44, %v730_v62 }
  0x35   :  { %1783 = vmatprep.subr.bf16.mxu0 %v2124_v53  ;;  %v777_v1 = vand.u32 4294901760, %v2180_v18  ;;  %v786_v27 = vand.u32 4294901760, %v785_v10  ;;  %v820_v50 = vsub.f32 %v2221_v40, %v819_v34  ;;  %v1312_v40 = vld [vmem:[%s2404_s2] ss:$0 sm:$0xff] }
  0x36   :  { %v750_v4 = vsub.f32 %v2150_v2, %v749_v63 }
  0x37   :  { %1522 = vmatmul.mubr.f32.vlgmr.msra.gmra.mrb[0].mxu0 %v2086_v14  ;;  %v635_v14 = vand.u32 4294901760, %v595_v11  ;;  %v778_v21 = vsub.f32 %v2180_v18, %v777_v1  ;;  %v821_v54 = vand.u32 4294901760, %v820_v50 }
  0x38   :  { %1785 = vmatpush3.bf16.msra.mxu0 %v2124_v53  ;;  %v751_v6 = vand.u32 4294901760, %v750_v4 }
  0x39   :  { %1787 = vmatprep.subr.bf16.mxu0 %v2160_v8  ;;  %v2178_v17 = vsub.f32 %v595_v11, %v635_v14  ;;  %v2206_v33 = vpack.c.bf16 %v638_v15, %v635_v14  ;;  %v757_v11 = vsub.f32 %v2162_v9, %v756_v58  ;;  %v765_v14 = vand.u32 4294901760, %v764_v12 }
  0x3a   :  { %v2262_v7 = vpack.c.bf16 %v751_v6, %v744_v5  ;;  %v791_v9 = vand.u32 4294901760, %v2211_v35 }
  0x3b   :  { %v1862_v23 = vpack.c.bf16 %v2180_v18, %v2178_v17  ;;  %v758_v13 = vand.u32 4294901760, %v757_v11  ;;  %v770_v15 = vand.u32 4294901760, %v2178_v17  ;;  %v799_v18 = vsub.f32 %v2213_v36, %v798_v29 }
  0x3c   :  { %1789 = vmatpush3.bf16.msra.mxu0 %v2160_v8  ;;  %v792_v26 = vsub.f32 %v2211_v35, %v791_v9  ;;  %v2294_v36 = vpack.c.bf16 %v735_v56, %v728_v55  ;;  %v2302_v44 = vpack.c.bf16 %v791_v9, %v784_v24 }
  0x3d   :  { %1791 = vmatprep.subr.bf16.mxu0 %v2176_v16  ;;  %1863 = vmatprep.subr.bf16.mxu1 %v1862_v23  ;;  %v2268_v20 = vpack.c.bf16 %v765_v14, %v758_v13  ;;  %v771_v2 = vsub.f32 %v2178_v17, %v770_v15  ;;  %v805_v17 = vand.u32 4294901760, %v2215_v37  ;;  %v800_v32 = vand.u32 4294901760, %v799_v18 }
  0x3e   :  { %1865 = vmatpush3.bf16.msra.mxu1 %v1862_v23  ;;  %v779_v23 = vand.u32 4294901760, %v778_v21  ;;  %v793_v28 = vand.u32 4294901760, %v792_v26  ;;  %v2300_v62 = vpack.c.bf16 %v777_v1, %v770_v15 }
  0x3f   :  { %1867 = vmatprep.subr.bf16.mxu1 %v1866_v38  ;;  %v772_v22 = vand.u32 4294901760, %v771_v2  ;;  %v806_v31 = vsub.f32 %v2215_v37, %v805_v17  ;;  %v2296_v37 = vpack.c.bf16 %v749_v63, %v742_v47  ;;  %v2304_v3 = vpack.c.bf16 %v805_v17, %v798_v29 }
  0x40   :  { %1793 = vmatpush3.bf16.msra.mxu0 %v2176_v16  ;;  %v2280_v30 = vpack.c.bf16 %v793_v28, %v786_v27 }
  0x41   :  { %1795 = vmatprep.subr.bf16.mxu0 %v2182_v19  ;;  %v2274_v25 = vpack.c.bf16 %v779_v23, %v772_v22 }
  0x42   :  { %1869 = vmatpush3.bf16.msra.mxu1 %v1866_v38  ;;  %v807_v38 = vand.u32 4294901760, %v806_v31 }
  0x43   :  { %1871 = vmatprep.subr.bf16.mxu1 %v1870_v41 }
  0x44   :  { %1797 = vmatpush3.bf16.msra.mxu0 %v2182_v19 }
  0x45   :  { %1799 = vmatprep.subr.bf16.mxu0 %v2206_v33 }
  0x46   :  { %1873 = vmatpush3.bf16.msra.mxu1 %v1870_v41  ;;  %v812_v41 = vand.u32 4294901760, %v2219_v39 }
  0x47   :  { %1875 = vmatprep.subr.bf16.mxu1 %v1874_v43 }
  0x48   :  { %1801 = vmatpush3.bf16.msra.mxu0 %v2206_v33  ;;  %v813_v35 = vsub.f32 %v2219_v39, %v812_v41  ;;  %v2306_v39 = vpack.c.bf16 %v819_v34, %v812_v41 }
  0x49   :  { %1803 = vmatprep.subr.bf16.mxu0 %v2226_v42 }
  0x4a   :  { %1877 = vmatpush3.bf16.msra.mxu1 %v1874_v43  ;;  %v2286_v43 = vpack.c.bf16 %v807_v38, %v800_v32  ;;  %v814_v52 = vand.u32 4294901760, %v813_v35 }
  0x4b   :  { %1879 = vmatprep.subr.bf16.mxu1 %v2124_v53 }
  0x4c   :  { %1805 = vmatpush3.bf16.msra.mxu0 %v2226_v42  ;;  %v2292_v60 = vpack.c.bf16 %v821_v54, %v814_v52 }
  0x4d   :  { %1807 = vmatprep.subr.bf16.mxu0 %v2232_v45 }
  0x50   :  { %1809 = vmatpush3.bf16.msra.mxu0 %v2232_v45 }
  0x51   :  { %1811 = vmatprep.subr.bf16.mxu0 %v2236_v46 }
  0x54   :  { %1813 = vmatpush3.bf16.msra.mxu0 %v2236_v46 }
  0x55   :  { %1815 = vmatprep.subr.bf16.mxu0 %v2249_v57 }
 0x10a   :  { %v1523_v48 = vpop.f32.mrb[0].mxu0 }
 0x10b   :  { %v1974_v49 = vadd.f32 %v1523_v48, %v1312_v40  ;;  %v559_v55 = vpop.f32.mrb[1].mxu0 }
 0x10c   :  { %v1975_v56 = vadd.f32 %v1312_v40, %v559_v55 }
 0x10d   :  { %v572_v47 = vmul.f32 %v1974_v49, %v1974_v49  ;;  %v570_v6 = vmul.f32 0.7978846, %v1974_v49  ;;  %v580_v1 = vmul.f32 0.5, %v1974_v49 }
 0x10e   :  { %v571_v63 = vmul.f32 %v1975_v56, %v1975_v56  ;;  %v569_v59 = vmul.f32 0.7978846, %v1975_v56  ;;  %v579_v21 = vmul.f32 0.5, %v1975_v56 }
 0x10f   :  { %v574_v4 = vmul.f32 0.044715, %v572_v47 }
 0x110   :  { %v573_v5 = vmul.f32 0.044715, %v571_v63 }
 0x111   :  { %v576_v58 = vadd.f32 1.0, %v574_v4 }
 0x112   :  { %v575_v11 = vadd.f32 1.0, %v573_v5 }
 0x113   :  { %v578_v12 = vmul.f32 %v576_v58, %v570_v6 }
 0x114   :  { %v577_v13 = vmul.f32 %v575_v11, %v569_v59 }
 0x115   :  { %2001 = vtanh.f32 %v578_v12 }
 0x116   :  { %2003 = vtanh.f32 %v577_v13 }
 0x11f   :  { %v2002_v14 = vpop.eup %2001 }
 0x120   :  { %v2004_v15 = vpop.eup %2003  ;;  %v584_v2 = vadd.f32 1.0, %v2002_v14 }
 0x121   :  { %v583_v22 = vadd.f32 1.0, %v2004_v15 }
 0x122   :  { %v586_v23 = vmul.f32 %v584_v2, %v580_v1 }
 0x123   :  { %v585_v24 = vmul.f32 %v583_v22, %v579_v21 }
 0x124   :  { %v2311_v9 = vand.u32 4294901760, %v586_v23 }
 0x125   :  { %v2313_v10 = vand.u32 4294901760, %v585_v24 }
 0x126   :  { %v702_v26 = vsub.f32 %v586_v23, %v2311_v9 }
 0x127   :  { %v692_v27 = vsub.f32 %v585_v24, %v2313_v10 }
 0x128   :  { %v703_v28 = vand.u32 4294901760, %v702_v26 }
 0x129   :  { %1626 = vmatprep.mubr.f32.mxu1 %v692_v27  ;;  %v693_v29 = vand.u32 4294901760, %v692_v27 }
 0x12a   :  { %1627 = vmatmul.mubr.f32.vlgmr.msra.gmra.mrb[0].mxu1 %v702_v26  ;;  %v704_v17 = vsub.f32 %v702_v26, %v703_v28 }
 0x12b   :  { %1881 = vmatpush3.bf16.msra.mxu1 %v2124_v53  ;;  %1661 = vmatprep.mubr.f32.mxu1 %v693_v29  ;;  %v694_v18 = vsub.f32 %v692_v27, %v693_v29 }
 0x12c   :  { %1883 = vmatprep.subr.bf16.mxu1 %v2160_v8  ;;  %v705_v32 = vand.u32 4294901760, %v704_v17 }
 0x12d   :  { %v695_v31 = vand.u32 4294901760, %v694_v18 }
 0x12f   :  { %1885 = vmatpush3.bf16.msra.mxu1 %v2160_v8  ;;  %1556 = vmatprep.mubr.f32.mxu0 %v695_v31 }
 0x130   :  { %1557 = vmatmul.mubr.f32.vlgmr.msra.gmra.mrb[2].mxu0 %v705_v32  ;;  %1887 = vmatprep.subr.bf16.mxu1 %v2176_v16 }
 0x131   :  { %1817 = vmatpush3.bf16.msra.mxu0 %v2249_v57  ;;  %1591 = vmatprep.mubr.f32.mxu0 %v2313_v10 }
 0x132   :  { %1819 = vmatprep.subr.bf16.mxu0 %v2256_v0 }
 0x133   :  { %1889 = vmatpush3.bf16.msra.mxu1 %v2176_v16 }
 0x134   :  { %1891 = vmatprep.subr.bf16.mxu1 %v2182_v19 }
 0x135   :  { %1821 = vmatpush3.bf16.msra.mxu0 %v2256_v0 }
 0x136   :  { %1823 = vmatprep.subr.bf16.mxu0 %v2262_v7 }
 0x137   :  { %1893 = vmatpush3.bf16.msra.mxu1 %v2182_v19 }
 0x138   :  { %1895 = vmatprep.subr.bf16.mxu1 %v2206_v33 }
 0x139   :  { %1825 = vmatpush3.bf16.msra.mxu0 %v2262_v7 }
 0x13a   :  { %1827 = vmatprep.subr.bf16.mxu0 %v2268_v20 }
 0x13b   :  { %1897 = vmatpush3.bf16.msra.mxu1 %v2206_v33 }
 0x13c   :  { %1899 = vmatprep.subr.bf16.mxu1 %v2226_v42 }
 0x13d   :  { %1829 = vmatpush3.bf16.msra.mxu0 %v2268_v20 }
 0x13e   :  { %1831 = vmatprep.subr.bf16.mxu0 %v2274_v25 }
 0x13f   :  { %1901 = vmatpush3.bf16.msra.mxu1 %v2226_v42 }
 0x140   :  { %1903 = vmatprep.subr.bf16.mxu1 %v2232_v45 }
 0x141   :  { %1833 = vmatpush3.bf16.msra.mxu0 %v2274_v25 }
 0x142   :  { %1835 = vmatprep.subr.bf16.mxu0 %v2280_v30 }
 0x143   :  { %1905 = vmatpush3.bf16.msra.mxu1 %v2232_v45 }
 0x144   :  { %1907 = vmatprep.subr.bf16.mxu1 %v2236_v46 }
 0x145   :  { %1837 = vmatpush3.bf16.msra.mxu0 %v2280_v30 }
 0x146   :  { %1839 = vmatprep.subr.bf16.mxu0 %v2286_v43 }
 0x147   :  { %1909 = vmatpush3.bf16.msra.mxu1 %v2236_v46 }
 0x148   :  { %1911 = vmatprep.subr.bf16.mxu1 %v2290_v51 }
 0x149   :  { %1841 = vmatpush3.bf16.msra.mxu0 %v2286_v43 }
 0x14a   :  { %1662 = vmatmul.mubr.f32.vlgmr.msra.gmra.mrb[0].mxu1 %v703_v28  ;;  %1843 = vmatprep.subr.bf16.mxu0 %v2292_v60 }
 0x14b   :  { %1913 = vmatpush3.bf16.msra.mxu1 %v2290_v51  ;;  %1696 = vmatprep.mubr.f32.mxu1 %v2313_v10 }
 0x14c   :  { %1915 = vmatprep.subr.bf16.mxu1 %v2294_v36 }
 0x14d   :  { %1845 = vmatpush3.bf16.msra.mxu0 %v2292_v60 }
 0x14f   :  { %1917 = vmatpush3.bf16.msra.mxu1 %v2294_v36 }
 0x150   :  { %1592 = vmatmul.mubr.f32.vlgmr.msra.gmra.mrb[2].mxu0 %v2311_v9  ;;  %1919 = vmatprep.subr.bf16.mxu1 %v2296_v37 }
 0x153   :  { %1921 = vmatpush3.bf16.msra.mxu1 %v2296_v37 }
 0x154   :  { %1923 = vmatprep.subr.bf16.mxu1 %v2298_v61 }
 0x157   :  { %1925 = vmatpush3.bf16.msra.mxu1 %v2298_v61 }
 0x158   :  { %1927 = vmatprep.subr.bf16.mxu1 %v2300_v62 }
 0x15b   :  { %1929 = vmatpush3.bf16.msra.mxu1 %v2300_v62 }
 0x15c   :  { %1931 = vmatprep.subr.bf16.mxu1 %v2302_v44 }
 0x15f   :  { %1933 = vmatpush3.bf16.msra.mxu1 %v2302_v44 }
 0x160   :  { %1935 = vmatprep.subr.bf16.mxu1 %v2304_v3 }
 0x163   :  { %1937 = vmatpush3.bf16.msra.mxu1 %v2304_v3 }
 0x164   :  { %1939 = vmatprep.subr.bf16.mxu1 %v2306_v39 }
 0x167   :  { %1941 = vmatpush3.bf16.msra.mxu1 %v2306_v39 }
 0x168   :  { %1943 = vmatprep.subr.bf16.mxu1 %v2124_v53 }
 0x16a   :  { %1697 = vmatmul.mubr.f32.vlgmr.msra.gmra.mrb[0].mxu1 %v2311_v9 }
 0x16b   :  { %1945 = vmatpush3.bf16.msra.mxu1 %v2124_v53  ;;  %1731 = vmatprep.mubr.f32.mxu1 %v2313_v10 }
 0x16c   :  { %1947 = vmatprep.subr.bf16.mxu1 %v2160_v8 }
 0x16f   :  { %1949 = vmatpush3.bf16.msra.mxu1 %v2160_v8 }
 0x170   :  { %1951 = vmatprep.subr.bf16.mxu1 %v2176_v16 }
 0x173   :  { %1953 = vmatpush3.bf16.msra.mxu1 %v2176_v16  ;;  %v1313_v16 = vld [vmem:[%s2406_s4] ss:$0 sm:$0xff] }
 0x174   :  { %1955 = vmatprep.subr.bf16.mxu1 %v2182_v19 }
 0x177   :  { %1957 = vmatpush3.bf16.msra.mxu1 %v2182_v19 }
 0x178   :  { %1959 = vmatprep.subr.bf16.mxu1 %v2206_v33 }
 0x17b   :  { %1961 = vmatpush3.bf16.msra.mxu1 %v2206_v33 }
 0x17c   :  { %1963 = vmatprep.subr.bf16.mxu1 %v2226_v42 }
 0x17f   :  { %1965 = vmatpush3.bf16.msra.mxu1 %v2226_v42 }
 0x180   :  { %1967 = vmatprep.subr.bf16.mxu1 %v2232_v45 }
 0x183   :  { %1969 = vmatpush3.bf16.msra.mxu1 %v2232_v45 }
 0x184   :  { %1971 = vmatprep.subr.bf16.mxu1 %v2236_v46 }
 0x187   :  { %1973 = vmatpush3.bf16.msra.mxu1 %v2236_v46 }
 0x18a   :  { %1732 = vmatmul.mubr.f32.vlgmr.msra.gmra.mrb[0].mxu1 %v2311_v9 }
 0x223   :  { %v1593_v53 = vpop.f32.mrb[2].mxu0 }
 0x224   :  { %v858_v8 = vpop.f32.mrb[3].mxu0  ;;  %v1976_v19 = vadd.f32 %v1593_v53, %v1313_v16 }
 0x225   :  { %v1978_v33 = vadd.f32 %v1313_v16, %v858_v8 }
 0x25d   :  { %v1733_v42 = vpop.f32.mrb[0].mxu1 }
 0x25e   :  { %v1977_v57 = vadd.f32 %v1976_v19, %v1733_v42  ;;  %v1284_v0 = vpop.f32.mrb[1].mxu1 }
 0x25f   :  { %v1979_v45 = vadd.f32 %v1978_v33, %v1284_v0 }
 0x260   :  { %1295 = vst.msk [vmem:[#allocation2 + $0x8] sm:$0xff] %vm34_vm0, %v1977_v57 }
 0x261   :  { %1294 = vst.msk [vmem:[#allocation2] sm:$0xff] %vm34_vm0, %v1979_v45 }
 0x262   :  { %2016 = shalt.err (!%p2013_p4)
}
 0x263   :  { %s2017_s14 = scalar_lea.hbm %s2407_s5, 256 }
 0x264   :  { %p2018_p5 = scmp.ne.s32.totalorder %s2407_s5, %s2017_s14  ;;  %p2021_p6 = scmp.lt.u32.totalorder %s2017_s14, %s2407_s5 }
 0x266   :  { %p2023_p7 = pnand %p2021_p6, %p2018_p5 }
 0x268   :  { %2026 = shalt.err (!%p2023_p7)
}
 0x269   :  { %s2030_s19 = smov 128   ;;  %s2031_s20 = smov 8  }
 0x26a   :  { %1307 = dma.vmem_to_hbm [thread:$0]  %s1302_s11, 256, %s2407_s5, [#allocation3], %s2030_s19, %s2030_s19, %s2031_s20  }
 0x26b   :  { %2027 = dma.done.wait [#allocation3], 256  }
 0x26c   :  { %2028 = vsyncadd [#allocation3], 4294967040 }
 0x26d   :  { %1311 = vsyncpa [#allocation3], 1 }

</bundles_post_ra>
